<compile_context>
chip_gen: v7x
topology: tpu7x:2x2x1
jax: 0.10.0
libtpu: 0.0.40
codegen_flags: <defaults>
</compile_context>

<pallas_src>
import functools

import jax
import jax.numpy as jnp
from jax.experimental import pallas as pl
from jax.experimental.pallas import tpu as pltpu


def _round_up(v: int, m: int) -> int:
    return (v + m - 1) // m * m


def _regression_kernel(x_ref, w1_ref, b1_ref, w2_ref, b2_ref, w3_ref, b3_ref,
                       out_ref, map_ref):
    """Fused MLP + regression head for one batch tile.

    x:   (TB, D0p)  bf16
    w1:  (D0p, H1p) bf16,  b1: (1, H1p) f32
    w2:  (H1p, H2p) bf16,  b2: (1, H2p) f32
    w3:  (1, H2p)   f32 (head weights as a row), b3: (1, 1) f32 in SMEM
    out: (TB, 1)    f32   -- regression output
    map: (TB, H2p)  f32   -- out_mappings (post-ReLU hidden features, padded)
    """
    x = x_ref[...]                                               # bf16

    # Layer 1: Linear + ReLU (Dropout = identity in eval).
    h1 = jnp.dot(x, w1_ref[...], preferred_element_type=jnp.float32)
    h1 = jnp.maximum(h1 + b1_ref[...], 0.0)                      # f32

    # Layer 2: Linear + ReLU (Dropout = identity in eval).
    h2 = jnp.dot(h1.astype(jnp.bfloat16), w2_ref[...],
                 preferred_element_type=jnp.float32)
    h2 = jnp.maximum(h2 + b2_ref[...], 0.0)                      # (TB, H2p) f32

    map_ref[...] = h2.astype(map_ref.dtype)

    # Regression head: width-1 output -> VPU multiply + XLU reduce, not MXU.
    y = jnp.sum(h2 * w3_ref[...], axis=-1, keepdims=True) + b3_ref[0, 0]
    out_ref[...] = y.astype(out_ref.dtype)


@functools.partial(jax.jit, static_argnames=("tb_max",))
def regression_network(inputs, w1, b1, w2, b2, w3, b3, tb_max=256):
    """inputs: (..., nodes, seq). Returns (out, out_mappings)."""
    lead = inputs.shape[:-2]
    nodes, seq = inputs.shape[-2], inputs.shape[-1]
    d0 = nodes * seq
    h1 = w1.shape[1]
    h2 = w2.shape[1]

    x = inputs.reshape((-1, d0))
    b = x.shape[0]

    # Lane/sublane-friendly padded dims.
    d0p = _round_up(d0, 128)
    h1p = _round_up(h1, 128)
    h2p = _round_up(h2, 128)
    tb = min(tb_max, _round_up(b, 8))       # batch tile (multiple of 8)
    bp = _round_up(b, tb)                   # padded batch

    # Zero-pad & cast operands. Padded columns/rows are zero so they contribute
    # nothing: h1/h2 padded features are ReLU(0 + 0) = 0 and W3 padded rows = 0.
    xp = jnp.zeros((bp, d0p), jnp.bfloat16).at[:b, :d0].set(x.astype(jnp.bfloat16))
    w1p = jnp.zeros((d0p, h1p), jnp.bfloat16).at[:d0, :h1].set(w1.astype(jnp.bfloat16))
    b1p = jnp.zeros((1, h1p), jnp.float32).at[0, :h1].set(b1.astype(jnp.float32))
    w2p = jnp.zeros((h1p, h2p), jnp.bfloat16).at[:h1, :h2].set(w2.astype(jnp.bfloat16))
    b2p = jnp.zeros((1, h2p), jnp.float32).at[0, :h2].set(b2.astype(jnp.float32))
    w3p = jnp.zeros((1, h2p), jnp.float32).at[0, :h2].set(
        w3.reshape(-1).astype(jnp.float32))
    b3p = b3.reshape(1, 1).astype(jnp.float32)

    grid = (bp // tb,)

    # VMEM budget estimate (double-buffer everything, conservatively), clamped
    # to stay within v7x's 64 MiB physical VMEM.
    vmem_need = (
        2 * (tb * d0p * 2)                                  # x tiles (bf16)
        + 2 * (tb * h2p * 4 + tb * 4)                       # out / map tiles
        + 2 * (d0p * h1p * 2 + h1p * h2p * 2                # resident weights
               + h1p * 4 + h2p * 4 + h2p * 4)               # biases + w3 row
    )
    vmem_limit = min(max(vmem_need + (4 << 20), 32 << 20), 60 << 20)

    out_pad, map_pad = pl.pallas_call(
        _regression_kernel,
        grid=grid,
        out_shape=(
            jax.ShapeDtypeStruct((bp, 1), jnp.float32),
            jax.ShapeDtypeStruct((bp, h2p), jnp.float32),
        ),
        in_specs=[
            pl.BlockSpec((tb, d0p), lambda i: (i, 0)),      # x (tiled)
            pl.BlockSpec((d0p, h1p), lambda i: (0, 0)),     # w1 (resident)
            pl.BlockSpec((1, h1p), lambda i: (0, 0)),       # b1
            pl.BlockSpec((h1p, h2p), lambda i: (0, 0)),     # w2 (resident)
            pl.BlockSpec((1, h2p), lambda i: (0, 0)),       # b2
            pl.BlockSpec((1, h2p), lambda i: (0, 0)),       # w3 row
            pl.BlockSpec(memory_space=pltpu.MemorySpace.SMEM),  # b3 scalar
        ],
        out_specs=(
            pl.BlockSpec((tb, 1), lambda i: (i, 0)),        # out (tiled)
            pl.BlockSpec((tb, h2p), lambda i: (i, 0)),      # mappings (tiled)
        ),
        compiler_params=pltpu.CompilerParams(
            dimension_semantics=("parallel",),
            vmem_limit_bytes=vmem_limit,
        ),
    )(xp, w1p, b1p, w2p, b2p, w3p, b3p)

    out = out_pad[:b, :].reshape(lead + (1,))
    mappings = map_pad[:b, :h2].reshape(lead + (h2,))
    return out, mappings


def init_params(key, nodes, seq, r_mlp_ratio):
    """Deterministic synthetic parameter init (matches PyTorch shapes)."""
    d0 = nodes * seq
    h1 = int(r_mlp_ratio * nodes * seq)
    h2 = int(0.3 * r_mlp_ratio * nodes * seq)
    ks = jax.random.split(key, 6)
    scale = 0.05
    w1 = scale * jax.random.normal(ks[0], (d0, h1), jnp.float32)
    b1 = scale * jax.random.normal(ks[1], (h1,), jnp.float32)
    w2 = scale * jax.random.normal(ks[2], (h1, h2), jnp.float32)
    b2 = scale * jax.random.normal(ks[3], (h2,), jnp.float32)
    w3 = scale * jax.random.normal(ks[4], (h2, 1), jnp.float32)
    b3 = scale * jax.random.normal(ks[5], (1,), jnp.float32)
    return w1, b1, w2, b2, w3, b3


def _reference(inputs, w1, b1, w2, b2, w3, b3):
    """Pure-JAX f32 reference (matches the PyTorch module in eval mode)."""
    x = inputs.reshape(inputs.shape[:-2] + (-1,)).astype(jnp.float32)
    h1 = jnp.maximum(x @ w1 + b1, 0.0)
    h2 = jnp.maximum(h1 @ w2 + b2, 0.0)
    y = h2 @ w3 + b3
    return y, h2


if __name__ == "__main__":
    # Small shapes consistent with the module's forward: inputs (batch, nodes, seq)
    batch, nodes, seq = 8, 16, 8
    r_mlp_ratio = 2.0          # -> D0 = 128, H1 = 256, H2 = int(0.3*2.0*128) = 76
    r_mlp_dropout = 0.1        # identity in eval mode

    key = jax.random.PRNGKey(0)
    k_in, k_par = jax.random.split(key)
    inputs = jax.random.normal(k_in, (batch, nodes, seq), jnp.float32)
    params = init_params(k_par, nodes, seq, r_mlp_ratio)

    out, mappings = regression_network(inputs, *params)
    out, mappings = jax.block_until_ready((out, mappings))

    ref_out, ref_map = _reference(inputs, *params)
    h2_dim = int(0.3 * r_mlp_ratio * nodes * seq)
    assert out.shape == (batch, 1), out.shape
    assert mappings.shape == (batch, h2_dim), mappings.shape
    # Loosened tolerance: MXU operands are bf16 (accumulation stays f32).
    assert jnp.allclose(out, ref_out, atol=2e-2, rtol=2e-2), \
        float(jnp.max(jnp.abs(out - ref_out)))
    assert jnp.allclose(mappings, ref_map, atol=2e-2, rtol=2e-2), \
        float(jnp.max(jnp.abs(mappings - ref_map)))

    print("KERNEL_OK")
</pallas_src>

<mosaic_0001>
module attributes {stable_mosaic.version = 11 : i64} {
  func.func @_regression_kernel(%arg0: i32, %arg1: memref<8x128xbf16, #tpu.memory_space<vmem>>, %arg2: memref<128x256xbf16, #tpu.memory_space<vmem>>, %arg3: memref<1x256xf32, #tpu.memory_space<vmem>>, %arg4: memref<256x128xbf16, #tpu.memory_space<vmem>>, %arg5: memref<1x128xf32, #tpu.memory_space<vmem>>, %arg6: memref<1x128xf32, #tpu.memory_space<vmem>>, %arg7: memref<1x1xf32, #tpu.memory_space<smem>>, %arg8: memref<8x1xf32, #tpu.memory_space<vmem>>, %arg9: memref<8x128xf32, #tpu.memory_space<vmem>>) attributes {dimension_semantics = [#tpu.dimension_semantics<parallel>], iteration_bounds = array<i64: 1>, scalar_prefetch = 0 : i64, scratch_operands = 0 : i64, tpu.core_type = #tpu.core_type<tc>, window_params = [{transform_indices = @transform_0, window_bounds = array<i64: 8, 128>}, {pipeline_mode = #tpu.pipeline_mode<synchronous>, transform_indices = @transform_1, window_bounds = array<i64: 128, 256>}, {pipeline_mode = #tpu.pipeline_mode<synchronous>, transform_indices = @transform_2, window_bounds = array<i64: 1, 256>}, {pipeline_mode = #tpu.pipeline_mode<synchronous>, transform_indices = @transform_3, window_bounds = array<i64: 256, 128>}, {pipeline_mode = #tpu.pipeline_mode<synchronous>, transform_indices = @transform_4, window_bounds = array<i64: 1, 128>}, {pipeline_mode = #tpu.pipeline_mode<synchronous>, transform_indices = @transform_5, window_bounds = array<i64: 1, 128>}, {transform_indices = @transform_6, window_bounds = array<i64: 1, 1>}, {transform_indices = @transform_7, window_bounds = array<i64: 8, 1>}, {transform_indices = @transform_8, window_bounds = array<i64: 8, 128>}]} {
    %c0 = arith.constant 0 : index
    %c0_0 = arith.constant 0 : index
    %0 = vector.load %arg1[%c0, %c0_0] : memref<8x128xbf16, #tpu.memory_space<vmem>>, vector<8x128xbf16>
    %c0_1 = arith.constant 0 : index
    %c0_2 = arith.constant 0 : index
    %1 = vector.load %arg2[%c0_1, %c0_2] : memref<128x256xbf16, #tpu.memory_space<vmem>>, vector<128x256xbf16>
    %cst = arith.constant dense<0.000000e+00> : vector<8x256xf32>
    %2 = tpu.matmul %0, %1, %cst {dimension_numbers = #tpu.dot_dimension_numbers<[1], [0], [0], [1], [0, 0, 1, 1], [], []>} : vector<8x128xbf16>, vector<128x256xbf16>, vector<8x256xf32> -> vector<8x256xf32>
    %c0_3 = arith.constant 0 : index
    %c0_4 = arith.constant 0 : index
    %3 = vector.load %arg3[%c0_3, %c0_4] : memref<1x256xf32, #tpu.memory_space<vmem>>, vector<1x256xf32>
    %4 = vector.broadcast %3 : vector<1x256xf32> to vector<8x256xf32>
    %5 = arith.addf %2, %4 : vector<8x256xf32>
    %cst_5 = arith.constant 0.000000e+00 : f32
    %6 = vector.broadcast %cst_5 : f32 to vector<8x256xf32>
    %7 = arith.maximumf %5, %6 : vector<8x256xf32>
    %8 = arith.truncf %7 : vector<8x256xf32> to vector<8x256xbf16>
    %c0_6 = arith.constant 0 : index
    %c0_7 = arith.constant 0 : index
    %9 = vector.load %arg4[%c0_6, %c0_7] : memref<256x128xbf16, #tpu.memory_space<vmem>>, vector<256x128xbf16>
    %cst_8 = arith.constant dense<0.000000e+00> : vector<8x128xf32>
    %10 = tpu.matmul %8, %9, %cst_8 {dimension_numbers = #tpu.dot_dimension_numbers<[1], [0], [0], [1], [0, 0, 1, 1], [], []>} : vector<8x256xbf16>, vector<256x128xbf16>, vector<8x128xf32> -> vector<8x128xf32>
    %c0_9 = arith.constant 0 : index
    %c0_10 = arith.constant 0 : index
    %11 = vector.load %arg5[%c0_9, %c0_10] : memref<1x128xf32, #tpu.memory_space<vmem>>, vector<1x128xf32>
    %12 = vector.broadcast %11 : vector<1x128xf32> to vector<8x128xf32>
    %13 = arith.addf %10, %12 : vector<8x128xf32>
    %cst_11 = arith.constant 0.000000e+00 : f32
    %14 = vector.broadcast %cst_11 : f32 to vector<8x128xf32>
    %15 = arith.maximumf %13, %14 : vector<8x128xf32>
    %c0_12 = arith.constant 0 : index
    %c0_13 = arith.constant 0 : index
    %16 = vector.load %arg9[%c0_12, %c0_13] : memref<8x128xf32, #tpu.memory_space<vmem>>, vector<8x128xf32>
    tpu.vector_store %arg9[%c0_12, %c0_13], %15 {strides = array<i32>} : memref<8x128xf32, #tpu.memory_space<vmem>>, vector<8x128xf32>,
    %c0_14 = arith.constant 0 : index
    %c0_15 = arith.constant 0 : index
    %17 = vector.load %arg6[%c0_14, %c0_15] : memref<1x128xf32, #tpu.memory_space<vmem>>, vector<1x128xf32>
    %18 = vector.broadcast %17 : vector<1x128xf32> to vector<8x128xf32>
    %19 = arith.mulf %15, %18 : vector<8x128xf32>
    %cst_16 = arith.constant dense<0.000000e+00> : vector<8xf32>
    %20 = vector.multi_reduction <add>, %19, %cst_16 [1] : vector<8x128xf32> to vector<8xf32>
    %21 = vector.shape_cast %20 : vector<8xf32> to vector<8x1xf32>
    %c0_17 = arith.constant 0 : index
    %c0_18 = arith.constant 0 : index
    %22 = memref.load %arg7[%c0_17, %c0_18] : memref<1x1xf32, #tpu.memory_space<smem>>
    %23 = vector.broadcast %22 : f32 to vector<8x1xf32>
    %24 = arith.addf %21, %23 : vector<8x1xf32>
    %c0_19 = arith.constant 0 : index
    %c0_20 = arith.constant 0 : index
    %25 = vector.load %arg8[%c0_19, %c0_20] : memref<8x1xf32, #tpu.memory_space<vmem>>, vector<8x1xf32>
    tpu.vector_store %arg8[%c0_19, %c0_20], %24 {strides = array<i32>} : memref<8x1xf32, #tpu.memory_space<vmem>>, vector<8x1xf32>,
    return
  }
  func.func @transform_0(%arg0: i32) -> (i32, i32) {
    %c0_i32 = arith.constant 0 : i32
    %c0_i32_0 = arith.constant 0 : i32
    return %arg0, %c0_i32 : i32, i32
  }
  func.func @transform_1(%arg0: i32) -> (i32, i32) {
    %c0_i32 = arith.constant 0 : i32
    %c0_i32_0 = arith.constant 0 : i32
    %c0_i32_1 = arith.constant 0 : i32
    return %c0_i32, %c0_i32_0 : i32, i32
  }
  func.func @transform_2(%arg0: i32) -> (i32, i32) {
    %c0_i32 = arith.constant 0 : i32
    %c0_i32_0 = arith.constant 0 : i32
    %c0_i32_1 = arith.constant 0 : i32
    return %c0_i32, %c0_i32_0 : i32, i32
  }
  func.func @transform_3(%arg0: i32) -> (i32, i32) {
    %c0_i32 = arith.constant 0 : i32
    %c0_i32_0 = arith.constant 0 : i32
    %c0_i32_1 = arith.constant 0 : i32
    return %c0_i32, %c0_i32_0 : i32, i32
  }
  func.func @transform_4(%arg0: i32) -> (i32, i32) {
    %c0_i32 = arith.constant 0 : i32
    %c0_i32_0 = arith.constant 0 : i32
    %c0_i32_1 = arith.constant 0 : i32
    return %c0_i32, %c0_i32_0 : i32, i32
  }
  func.func @transform_5(%arg0: i32) -> (i32, i32) {
    %c0_i32 = arith.constant 0 : i32
    %c0_i32_0 = arith.constant 0 : i32
    %c0_i32_1 = arith.constant 0 : i32
    return %c0_i32, %c0_i32_0 : i32, i32
  }
  func.func @transform_6(%arg0: i32) -> (i32, i32) {
    %c0_i32 = arith.constant 0 : i32
    %c0_i32_0 = arith.constant 0 : i32
    %c0_i32_1 = arith.constant 0 : i32
    return %c0_i32, %c0_i32_0 : i32, i32
  }
  func.func @transform_7(%arg0: i32) -> (i32, i32) {
    %c0_i32 = arith.constant 0 : i32
    %c0_i32_0 = arith.constant 0 : i32
    return %arg0, %c0_i32 : i32, i32
  }
  func.func @transform_8(%arg0: i32) -> (i32, i32) {
    %c0_i32 = arith.constant 0 : i32
    %c0_i32_0 = arith.constant 0 : i32
    return %arg0, %c0_i32 : i32, i32
  }
}

</mosaic_0001>

<bundles_post_ra>
// kernel: regression_network.1
= control target key start
LH: loop header
LB: loop body
LE: loop exit
PB: predicated region body
PF: predicated region fallthrough
CT: control target
= control target key end

     0   :  { %v517_v2 = vmov 0   ;;  %s690_s0 = inlined_call_operand.vmem [shape: bf16[8,128], index: 0, kind: input, shape index: {}]   ;;  %s691_s1 = inlined_call_operand.vmem [shape: bf16[128,256], index: 1, kind: input, shape index: {}]   ;;  %s692_s2 = inlined_call_operand.vmem [shape: f32[1,256], index: 2, kind: input, shape index: {}]   ;;  %s693_s3 = inlined_call_operand.vmem [shape: bf16[256,128], index: 3, kind: input, shape index: {}]   ;;  %s694_s4 = inlined_call_operand.vmem [shape: f32[1,128], index: 4, kind: input, shape index: {}]   ;;  %s695_s5 = inlined_call_operand.vmem [shape: f32[1,128], index: 5, kind: input, shape index: {}]   ;;  %s696_s6 = inlined_call_operand.<no memory space> [shape: f32[1,1], index: 6, kind: input, shape index: {}]   ;;  %s697_s7 = inlined_call_operand.vmem [shape: f32[8,1], index: 7, kind: output, shape index: {0}]   ;;  %s698_s8 = inlined_call_operand.hbm [shape: f32[8,128], index: 8, kind: output, shape index: {1}]  }
   0x1   :  { %v453_v0 = vld [vmem:[%s691_s1 + $0x4] ss:$8 sps:$4 sm:$0xff]   ;;  %v455_v1 = vld [vmem:[%s691_s1] ss:$8 sps:$4 sm:$0xff]   ;;  %172 = vmatprep.mubr.bf16.mxu0 %v517_v2  ;;  %v456_v3 = vld [vmem:[%s691_s1 + $0x14] ss:$8 sps:$4 sm:$0xff]  }
   0x2   :  { %140 = vmatprep.subr.bf16.mxu0 %v453_v0  ;;  %v458_v4 = vld [vmem:[%s691_s1 + $0x10] ss:$8 sps:$4 sm:$0xff]   ;;  %v459_v5 = vld [vmem:[%s691_s1 + $0x24] ss:$8 sps:$4 sm:$0xff]   ;;  %v461_v6 = vld [vmem:[%s691_s1 + $0x20] ss:$8 sps:$4 sm:$0xff]  }
   0x3   :  { %141 = vmatpush1.bf16.msra.mxu0 %v455_v1  ;;  %v462_v7 = vld [vmem:[%s691_s1 + $0x34] ss:$8 sps:$4 sm:$0xff]   ;;  %v464_v8 = vld [vmem:[%s691_s1 + $0x30] ss:$8 sps:$4 sm:$0xff]   ;;  %v465_v9 = vld [vmem:[%s691_s1 + $0x44] ss:$8 sps:$4 sm:$0xff]  }
   0x4   :  { %142 = vmatprep.subr.bf16.mxu0 %v456_v3  ;;  %v477_v10 = vld [vmem:[%s693_s3 + $0x40] sm:$0xff]   ;;  %v479_v13 = vld [vmem:[%s693_s3 + $0x48] sm:$0xff]   ;;  %v481_v15 = vld [vmem:[%s693_s3 + $0x50] sm:$0xff]  }
   0x5   :  { %v478_v11 = vld [vmem:[%s693_s3] sm:$0xff]   ;;  %429 = vmatprep.subr.bf16.mxu1 %v477_v10  ;;  %v480_v14 = vld [vmem:[%s693_s3 + $0x8] sm:$0xff]   ;;  %v468_v16 = vld [vmem:[%s691_s1 + $0x54] ss:$8 sps:$4 sm:$0xff]  }
   0x6   :  { %v467_v12 = vld [vmem:[%s691_s1 + $0x40] ss:$8 sps:$4 sm:$0xff]   ;;  %430 = vmatpush3.bf16.msra.mxu1 %v478_v11  ;;  %v470_v17 = vld [vmem:[%s691_s1 + $0x50] ss:$8 sps:$4 sm:$0xff]   ;;  %v471_v20 = vld [vmem:[%s691_s1 + $0x64] ss:$8 sps:$4 sm:$0xff]  }
   0x7   :  { %143 = vmatpush1.bf16.msra.mxu0 %v458_v4  ;;  %431 = vmatprep.subr.bf16.mxu1 %v479_v13  ;;  %v482_v18 = vld [vmem:[%s693_s3 + $0x10] sm:$0xff]   ;;  %v483_v19 = vld [vmem:[%s693_s3 + $0x58] sm:$0xff]   ;;  %v473_v21 = vld [vmem:[%s691_s1 + $0x60] ss:$8 sps:$4 sm:$0xff]  }
   0x8   :  { %144 = vmatprep.subr.bf16.mxu0 %v459_v5  ;;  %v474_v22 = vld [vmem:[%s691_s1 + $0x74] ss:$8 sps:$4 sm:$0xff]   ;;  %v485_v24 = vld [vmem:[%s693_s3 + $0x60] sm:$0xff]  }
   0x9   :  { %v484_v23 = vld [vmem:[%s693_s3 + $0x18] sm:$0xff]   ;;  %v486_v25 = vld [vmem:[%s693_s3 + $0x20] sm:$0xff]  }
   0xa   :  { %432 = vmatpush3.bf16.msra.mxu1 %v480_v14 }
   0xb   :  { %145 = vmatpush1.bf16.msra.mxu0 %v461_v6  ;;  %433 = vmatprep.subr.bf16.mxu1 %v481_v15 }
   0xc   :  { %146 = vmatprep.subr.bf16.mxu0 %v462_v7 }
   0xe   :  { %434 = vmatpush3.bf16.msra.mxu1 %v482_v18 }
   0xf   :  { %147 = vmatpush1.bf16.msra.mxu0 %v464_v8  ;;  %435 = vmatprep.subr.bf16.mxu1 %v483_v19 }
  0x10   :  { %148 = vmatprep.subr.bf16.mxu0 %v465_v9 }
  0x12   :  { %436 = vmatpush3.bf16.msra.mxu1 %v484_v23 }
  0x13   :  { %149 = vmatpush1.bf16.msra.mxu0 %v467_v12 }
  0x14   :  { %150 = vmatprep.subr.bf16.mxu0 %v468_v16 }
  0x17   :  { %151 = vmatpush1.bf16.msra.mxu0 %v470_v17 }
  0x18   :  { %152 = vmatprep.subr.bf16.mxu0 %v471_v20 }
  0x19   :  { %15 = vsyncpa [#allocation4], 0  ;;  %v476_v26 = vld [vmem:[%s691_s1 + $0x70] ss:$8 sps:$4 sm:$0xff]   ;;  %437 = vmatprep.subr.bf16.mxu1 %v485_v24  ;;  %v487_v27 = vld [vmem:[%s693_s3 + $0x68] sm:$0xff]   ;;  %v50_v34 = vlaneseq  ;;  %s518_s29 = smov [#allocation3]  }
  0x1a   :  { %438 = vmatpush3.bf16.msra.mxu1 %v486_v25  ;;  %v488_v28 = vld [vmem:[%s693_s3 + $0x28] sm:$0xff]   ;;  %v31_v29 = vld [vmem:[%s690_s0] sm:$0xf]  ;;  %v489_v30 = vld [vmem:[%s693_s3 + $0x70] sm:$0xff]   ;;  %s385_s30 = sshll.u32 %s518_s29, 4  ;;  %s386_s30 = int_to_ptr.vmem [resolvable:$true] %s385_s30 }
  0x1b   :  { %153 = vmatpush1.bf16.msra.mxu0 %v473_v21  ;;  %439 = vmatprep.subr.bf16.mxu1 %v487_v27  ;;  %v490_v31 = vld [vmem:[%s693_s3 + $0x30] sm:$0xff]   ;;  %v491_v32 = vld [vmem:[%s693_s3 + $0x78] sm:$0xff]   ;;  %v51_v35 = vshrl.u32 %v50_v34, 7  ;;  %v48_v37 = vld [vmem:[%s692_s2] sm:$0x3]  ;;  %s493_s9 = scalar_lea.vmem %s386_s30, 128  ;;  %p498_p1 = scmp.lt.s32.totalorder %s386_s30, %s386_s30 }
  0x1c   :  { %154 = vmatprep.subr.bf16.mxu0 %v474_v22  ;;  %v492_v33 = vld [vmem:[%s693_s3 + $0x38] sm:$0xff]   ;;  %v411_v53 = vld [vmem:[%s694_s4] ss:$0 sm:$0xff]  ;;  %p494_p0 = scmp.ne.s32.totalorder %s386_s30, %s493_s9  ;;  %p499_p2 = scmp.lt.s32.totalorder %s493_s9, %s493_s9 }
  0x1d   :  { %v52_v36 = vsub.s32 0, %v51_v35  ;;  %v56_v38 = vsub.s32 1, %v51_v35  ;;  %v428_v58 = vld [vmem:[%s695_s5] ss:$0 sm:$0xff] }
  0x1e   :  { %440 = vmatpush3.bf16.msra.mxu1 %v488_v28  ;;  %p500_p3 = por %p499_p2, %p498_p1 }
  0x1f   :  { %155 = vmatpush1.bf16.msra.mxu0 %v476_v26  ;;  %441 = vmatprep.subr.bf16.mxu1 %v489_v30  ;;  %v53_v39 = vrot.slane %v48_v37, %v52_v36  ;;  %v57_v40 = vrot.slane %v48_v37, %v56_v38 }
  0x20   :  { %p501_p4 = pnand %p500_p3, %p494_p0 }
  0x22   :  { %173 = vmatmul.mubr.bf16.vlgmr.msra.gmra.mrb[0].mxu0 %v31_v29  ;;  %442 = vmatpush3.bf16.msra.mxu1 %v490_v31 }
  0x23   :  { %443 = vmatprep.subr.bf16.mxu1 %v491_v32 }
  0x26   :  { %444 = vmatpush3.bf16.msra.mxu1 %v492_v33 }
  0xf5   :  { %v174_v41 = vpop.f32.mrb[0].mxu0 }
  0xf6   :  { %v175_v42 = vadd.f32 %v174_v41, %v53_v39  ;;  %v176_v43 = vpop.f32.mrb[1].mxu0 }
  0xf7   :  { %v177_v44 = vadd.f32 %v176_v43, %v57_v40  ;;  %v178_v45 = vpop.f32.mrb[2].mxu0 }
  0xf8   :  { %v181_v46 = vmax.f32 %v175_v42, 0.0  ;;  %v179_v47 = vpop.f32.mrb[3].mxu0 }
  0xf9   :  { %v182_v48 = vmax.f32 %v177_v44, 0.0 }
  0xfa   :  { %v183_v50 = vpack.c.bf16 %v181_v46, %v181_v46 }
  0xfb   :  { %v184_v49 = vpack.c.bf16 %v182_v48, %v182_v48 }
  0xfd   :  { %352 = vmatprep.mubr.bf16.mxu1 %v184_v49 }
  0xfe   :  { %353 = vmatmul.mubr.bf16.vlgmr.msra.gmra.mrb[0].mxu1 %v183_v50 }
 0x1d1   :  { %v445_v51 = vpop.f32.mrb[0].mxu1 }
 0x1d2   :  { %v446_v52 = vpop.f32.mrb[1].mxu1 }
 0x1d3   :  { %v447_v54 = vadd.f32 %v446_v52, %v445_v51  ;;  %v448_v55 = vpop.f32.mrb[2].mxu1 }
 0x1d4   :  { %v449_v56 = vpop.f32.mrb[3].mxu1 }
 0x1d5   :  { %v355_v57 = vadd.f32 %v447_v54, %v411_v53 }
 0x1d7   :  { %v360_v59 = vmax.f32 %v355_v57, 0.0 }
 0x1d9   :  { %v369_v60 = vmul.f32 %v428_v58, %v360_v59  ;;  %361 = vst [vmem:[#allocation3] sm:$0xff] %v360_v59 }
 0x1db   :  { %370 = vadd.xlane.f32.xlu0 %v369_v60 }
 0x1dc   :  { %504 = shalt.err (!%p501_p4)
}
 0x1dd   :  { %s505_s11 = scalar_lea.hbm %s698_s8, 128 }
 0x1de   :  { %p506_p5 = scmp.ne.s32.totalorder %s698_s8, %s505_s11  ;;  %p509_p6 = scmp.lt.u32.totalorder %s505_s11, %s698_s8 }
 0x1e0   :  { %p511_p7 = pnand %p509_p6, %p506_p5 }
 0x1e2   :  { %514 = shalt.err (!%p511_p7)
}
 0x1e3   :  { %388 = dma.vmem_to_hbm [thread:$0]  %s386_s30, 128, %s698_s8, [#allocation4]   ;;  %v373_v61 = vstv %s696_s6  ;;  %vm375_vm0 = vcmask 7168  }
 0x268   :  { %v371_v62 = vpop.xlane.xlu0 %370 }
 0x269   :  { %v374_v63 = vadd.f32 %v373_v61, %v371_v62 }
 0x26b   :  { %376 = vst.msk [vmem:[%s697_s7] sm:$0xff] %vm375_vm0, %v374_v63 }
 0x26c   :  { %515 = dma.done.wait [#allocation4], 128  }
 0x26d   :  { %516 = vsyncadd [#allocation4], 4294967168 }
 0x26e   :  { %394 = vsyncpa [#allocation4], 1 }

</bundles_post_ra>
